<compile_context>
chip_gen: v6e
topology: v6e:2x2x1
jax: 0.10.0
libtpu: 0.0.40
codegen_flags: <defaults>
</compile_context>

<pallas_src>
import functools

import jax
import jax.numpy as jnp
from jax.experimental import pallas as pl
from jax.experimental.pallas import tpu as pltpu


def _round_up(x, m):
    return (x + m - 1) // m * m


def _round_down(x, m):
    return (x // m) * m


def _vmem_capacity_bytes():
    """Generation-aware VMEM capacity; conservative 64 MiB (v7x) fallback."""
    try:
        info = pltpu.get_tpu_info()
        cap = int(getattr(info, "vmem_capacity_bytes", 0) or 0)
        if cap > 0:
            return cap
    except Exception:
        pass
    return 64 * 1024 * 1024


def _nll_loss_kernel(prob_ref, weight_ref, target_ref, out_ref, *, n_rows):
    i = pl.program_id(0)

    prob = prob_ref[...].astype(jnp.float32)   # (TM, C); cast is a no-op for f32 input
    w = weight_ref[...]                        # (1, C) f32 (pre-cast in wrapper)
    tgt = target_ref[...]                      # (TM, 1) int32
    tm, c = prob.shape

    # one-hot select: column index == target (broadcast (TM,1) against (TM,C))
    col = jax.lax.broadcasted_iota(jnp.int32, (tm, c), dimension=1)
    selected = jnp.where(col == tgt, w * prob, 0.0)            # (TM, C) f32

    # lane (C-axis) reduce -> per-row weighted pick; exact (one nonzero/row)
    per_row = jnp.sum(selected, axis=1, keepdims=True)         # (TM, 1)

    # gate padded / out-of-range tail rows AFTER the reduce (cheap (TM,1) domain)
    row = jax.lax.broadcasted_iota(jnp.int32, (tm, 1), dimension=0) + i * tm
    contrib = jnp.where(row < n_rows, per_row, 0.0)            # (TM, 1)

    # this block's partial sum -> own output block (parallel-safe)
    total = jnp.sum(contrib, axis=0, keepdims=True)            # (1, 1)
    out_ref[...] = total.reshape(1, 1, 1)


def nll_loss(prob, target, weight):
    """prob: (N, C) float, target: (N,) int, weight: (C,) float -> scalar f32."""
    N, C = prob.shape

    # Pad tiny N up to the 8-sublane minimum (padded rows are masked in-kernel).
    if N < 8:
        pad = 8 - N
        prob = jnp.pad(prob, ((0, pad), (0, 0)))
        target = jnp.pad(target, ((0, pad),))
    n_padded = prob.shape[0]

    itemsize = jnp.dtype(prob.dtype).itemsize
    lane = 128
    c_pad = _round_up(C, lane)

    # ---- VMEM accounting (bytes per tile row) -------------------------------
    prob_row_vmem = c_pad * itemsize       # prob tile row, lane-padded in VMEM
    tgt_row_vmem = lane * 4                # (TM,1) int32 block is lane-padded
    temp_row_vmem = 4 * c_pad * 4          # headroom for in-kernel f32 temporaries
    per_row_vmem = 2 * prob_row_vmem + 2 * tgt_row_vmem + temp_row_vmem

    vmem_cap = _vmem_capacity_bytes()
    vmem_limit = min((vmem_cap * 3) // 4, 96 * 1024 * 1024)   # 48 MiB on v7x, 96 MiB on v5e/v6e
    fixed_vmem = 2 * 1024 * 1024 + 2 * 8 * c_pad * 4          # slack + resident weight block
    tile_budget = max(vmem_limit - fixed_vmem, per_row_vmem * 8)

    # ---- Row-tile sizing: ~4 MiB of prob payload per step, within budget ----
    target_payload = 4 * 1024 * 1024
    tm_payload = _round_down(target_payload // max(C * itemsize, 1), 8)
    tm_budget = _round_down(tile_budget // per_row_vmem, 8)
    tm = max(8, min(tm_payload, tm_budget))
    tm = min(tm, max(8, _round_down(n_padded, 8)))

    grid = pl.cdiv(n_padded, tm)

    weight2d = weight.astype(jnp.float32).reshape(1, C)       # pre-cast, resident
    target2d = target.astype(jnp.int32).reshape(n_padded, 1)

    kernel = functools.partial(_nll_loss_kernel, n_rows=N)

    partials = pl.pallas_call(
        kernel,
        out_shape=jax.ShapeDtypeStruct((grid, 1, 1), jnp.float32),
        grid_spec=pltpu.PrefetchScalarGridSpec(
            num_scalar_prefetch=0,
            grid=(grid,),
            in_specs=[
                pl.BlockSpec((tm, C), lambda i: (i, 0)),      # prob: streamed row tiles
                pl.BlockSpec((1, C), lambda i: (0, 0)),       # weight: resident
                pl.BlockSpec((tm, 1), lambda i: (i, 0)),      # target: per-tile rows
            ],
            out_specs=pl.BlockSpec((1, 1, 1), lambda i: (i, 0, 0)),  # per-block partial
        ),
        compiler_params=pltpu.CompilerParams(
            dimension_semantics=("parallel",),                # lets v7x split tiles across TCs
            vmem_limit_bytes=int(vmem_limit),
        ),
    )(prob, weight2d, target2d)

    # Final reduction over per-block partials (tiny) in the wrapper.
    return -jnp.sum(partials)


def nll_loss_reference(prob, target, weight):
    """Pure-JAX reference matching the PyTorch forward (accumulated in f32)."""
    N, C = prob.shape
    one_hot = jax.nn.one_hot(target, C, dtype=jnp.float32)
    weighted = weight.astype(jnp.float32).reshape(1, C) * prob.astype(jnp.float32)
    return -jnp.sum(weighted * one_hot)


if __name__ == "__main__":
    key = jax.random.PRNGKey(0)
    k1, k2, k3 = jax.random.split(key, 3)

    N, C = 8, 32  # small shapes: batch of 8, 32 classes

    # "prob" in SeqGAN is log-softmax output; any float values work for the loss math.
    logits = jax.random.normal(k1, (N, C), dtype=jnp.float32)
    prob = jax.nn.log_softmax(logits, axis=-1)
    target = jax.random.randint(k2, (N,), 0, C, dtype=jnp.int32)
    # Deterministic per-class weight (module stores this in __init__).
    weight = jax.random.uniform(k3, (C,), dtype=jnp.float32, minval=0.5, maxval=1.5)

    loss = nll_loss(prob, target, weight)
    jax.block_until_ready(loss)

    ref = nll_loss_reference(prob, target, weight)
    assert jnp.allclose(loss, ref, rtol=1e-5, atol=1e-5), (loss, ref)

    print("KERNEL_OK")
</pallas_src>

<mosaic_0001>
module attributes {stable_mosaic.version = 11 : i64} {
  func.func @_nll_loss_kernel(%arg0: i32, %arg1: memref<8x32xf32, #tpu.memory_space<vmem>>, %arg2: memref<1x32xf32, #tpu.memory_space<vmem>>, %arg3: memref<8x1xi32, #tpu.memory_space<vmem>>, %arg4: memref<1x1x1xf32, #tpu.memory_space<vmem>>) attributes {dimension_semantics = [#tpu.dimension_semantics<parallel>], iteration_bounds = array<i64: 1>, scalar_prefetch = 0 : i64, scratch_operands = 0 : i64, tpu.core_type = #tpu.core_type<tc>, window_params = [{transform_indices = @transform_0, window_bounds = array<i64: 8, 32>}, {pipeline_mode = #tpu.pipeline_mode<synchronous>, transform_indices = @transform_1, window_bounds = array<i64: 1, 32>}, {transform_indices = @transform_2, window_bounds = array<i64: 8, 1>}, {transform_indices = @transform_3, window_bounds = array<i64: 1, 1, 1>}]} {
    %c0 = arith.constant 0 : index
    %c0_0 = arith.constant 0 : index
    %0 = vector.load %arg1[%c0, %c0_0] : memref<8x32xf32, #tpu.memory_space<vmem>>, vector<8x32xf32>
    %c0_1 = arith.constant 0 : index
    %c0_2 = arith.constant 0 : index
    %1 = vector.load %arg2[%c0_1, %c0_2] : memref<1x32xf32, #tpu.memory_space<vmem>>, vector<1x32xf32>
    %c0_3 = arith.constant 0 : index
    %c0_4 = arith.constant 0 : index
    %2 = vector.load %arg3[%c0_3, %c0_4] : memref<8x1xi32, #tpu.memory_space<vmem>>, vector<8x1xi32>
    %3 = tpu.iota {dimensions = array<i32: 1>} : vector<8x32xi32>
    %4 = vector.broadcast %2 : vector<8x1xi32> to vector<8x32xi32>
    %5 = arith.cmpi eq, %3, %4 : vector<8x32xi32>
    %6 = vector.broadcast %1 : vector<1x32xf32> to vector<8x32xf32>
    %7 = arith.mulf %6, %0 : vector<8x32xf32>
    %cst = arith.constant 0.000000e+00 : f32
    %8 = vector.broadcast %cst : f32 to vector<8x32xf32>
    %9 = arith.select %5, %7, %8 : vector<8x32xi1>, vector<8x32xf32>
    %cst_5 = arith.constant dense<0.000000e+00> : vector<8xf32>
    %10 = vector.multi_reduction <add>, %9, %cst_5 [1] : vector<8x32xf32> to vector<8xf32>
    %11 = vector.shape_cast %10 : vector<8xf32> to vector<8x1xf32>
    %12 = tpu.iota {dimensions = array<i32: 0>} : vector<8x1xi32>
    %c8_i32 = arith.constant 8 : i32
    %13 = arith.muli %arg0, %c8_i32 : i32
    %14 = vector.broadcast %13 : i32 to vector<8x1xi32>
    %15 = arith.addi %12, %14 : vector<8x1xi32>
    %c8_i32_6 = arith.constant 8 : i32
    %16 = vector.broadcast %c8_i32_6 : i32 to vector<8x1xi32>
    %17 = arith.cmpi slt, %15, %16 : vector<8x1xi32>
    %cst_7 = arith.constant 0.000000e+00 : f32
    %18 = vector.broadcast %cst_7 : f32 to vector<8x1xf32>
    %19 = arith.select %17, %11, %18 : vector<8x1xi1>, vector<8x1xf32>
    %cst_8 = arith.constant dense<0.000000e+00> : vector<1xf32>
    %20 = vector.multi_reduction <add>, %19, %cst_8 [0] : vector<8x1xf32> to vector<1xf32>
    %21 = vector.shape_cast %20 : vector<1xf32> to vector<1x1xf32>
    %22 = vector.shape_cast %21 : vector<1x1xf32> to vector<1x1x1xf32>
    %c0_9 = arith.constant 0 : index
    %c0_10 = arith.constant 0 : index
    %c0_11 = arith.constant 0 : index
    %23 = vector.load %arg4[%c0_9, %c0_10, %c0_11] : memref<1x1x1xf32, #tpu.memory_space<vmem>>, vector<1x1x1xf32>
    tpu.vector_store %arg4[%c0_9, %c0_10, %c0_11], %22 {strides = array<i32>} : memref<1x1x1xf32, #tpu.memory_space<vmem>>, vector<1x1x1xf32>,
    return
  }
  func.func @transform_0(%arg0: i32) -> (i32, i32) {
    %c0_i32 = arith.constant 0 : i32
    %c0_i32_0 = arith.constant 0 : i32
    return %arg0, %c0_i32 : i32, i32
  }
  func.func @transform_1(%arg0: i32) -> (i32, i32) {
    %c0_i32 = arith.constant 0 : i32
    %c0_i32_0 = arith.constant 0 : i32
    %c0_i32_1 = arith.constant 0 : i32
    return %c0_i32, %c0_i32_0 : i32, i32
  }
  func.func @transform_2(%arg0: i32) -> (i32, i32) {
    %c0_i32 = arith.constant 0 : i32
    %c0_i32_0 = arith.constant 0 : i32
    return %arg0, %c0_i32 : i32, i32
  }
  func.func @transform_3(%arg0: i32) -> (i32, i32, i32) {
    %c0_i32 = arith.constant 0 : i32
    %c0_i32_0 = arith.constant 0 : i32
    %c0_i32_1 = arith.constant 0 : i32
    return %arg0, %c0_i32, %c0_i32_0 : i32, i32, i32
  }
}

</mosaic_0001>

<bundles_post_ra>
// kernel: tpu_custom_call.1
= control target key start
LH: loop header
LB: loop body
LE: loop exit
PB: predicated region body
PF: predicated region fallthrough
CT: control target
= control target key end

     0   :  { %v91_v1 = vmov 0   ;;  %s125_s0 = inlined_call_operand.vmem [shape: f32[8,32], index: 0, kind: input, shape index: {}]   ;;  %s126_s1 = inlined_call_operand.vmem [shape: f32[1,32], index: 1, kind: input, shape index: {}]   ;;  %s127_s2 = inlined_call_operand.vmem [shape: s32[8,1], index: 2, kind: input, shape index: {}]   ;;  %s128_s3 = inlined_call_operand.hbm [shape: f32[1,1,1], index: 3, kind: output, shape index: {}]  }
   0x1   :  { %v17_v0 = vld [vmem:[%s127_s2] sm:$0xff]  ;;  %68 = vset.pattern.permute.xlu0 %v91_v1 }
   0x2   :  { %8 = vsyncpa [#allocation3], 0  ;;  %21 = vperm.xlu0 %68, %v17_v0   ;;  %v18_v2 = vlaneseq  ;;  %v15_v3 = vld [vmem:[%s125_s0] sm:$0xff]  ;;  %vm32_vm0 = vcmask 261120   ;;  %s92_s2 = smov [#allocation2]   ;;  %vm49_vm2 = vcmask 0  }
   0x3   :  { %v65_v4 = vld [vmem:[%s126_s1] ss:$0 sm:$0xff]  ;;  %s57_s18 = sshll.u32 %s92_s2, 4  ;;  %s58_s18 = int_to_ptr.vmem [resolvable:$true] %s57_s18 }
   0x4   :  { %v19_v5 = vand.u32 127, %v18_v2  ;;  %v30_v6 = vmul.f32 %v65_v4, %v15_v3  ;;  %s69_s0 = scalar_lea.vmem %s58_s18, 16  ;;  %s73_s1 = scalar_lea.vmem %s58_s18, 32 }
   0x5   :  { %p70_p0 = scmp.ne.s32.totalorder %s58_s18, %s69_s0  ;;  %p74_p1 = scmp.lt.s32.totalorder %s58_s18, %s58_s18 }
   0x6   :  { %p75_p2 = scmp.lt.s32.totalorder %s73_s1, %s69_s0 }
   0x8   :  { %p76_p3 = por %p75_p2, %p74_p1 }
   0xa   :  { %p77_p4 = pnand %p76_p3, %p70_p0 }
  0x7d   :  { %v22_v7 = vpop.permute.xlu0 %21 }
  0x7e   :  { %vm23_vm1 = vcmp.eq.s32.totalorder %v19_v5, %v22_v7 }
  0x7f   :  { %v31_v8 = vsel %vm23_vm1, %v30_v6, 0.0 }
  0x80   :  { %v33_v9 = vsel %vm32_vm0, %v31_v8, 0.0 }
  0x81   :  { %34 = vadd.xlane.f32.xlu0 %v33_v9 }
 0x10a   :  { %v35_v10 = vpop.xlane.xlu0 %34 }
 0x10b   :  { %v43_v11 = vrot.slane %v35_v10, 4 }
 0x10d   :  { %v44_v12 = vadd.f32 %v43_v11, %v35_v10 }
 0x10f   :  { %v45_v13 = vrot.slane %v44_v12, 2 }
 0x111   :  { %v46_v14 = vadd.f32 %v45_v13, %v44_v12 }
 0x113   :  { %v47_v15 = vrot.slane %v46_v14, 1 }
 0x115   :  { %v48_v16 = vadd.f32 %v47_v15, %v46_v14 }
 0x117   :  { %50 = vst.msk [vmem:[#allocation2] sm:$0x1] %vm49_vm2, %v48_v16 }
 0x118   :  { %80 = shalt.err (!%p77_p4)
}
 0x119   :  { %60 = dma.vmem_to_hbm [thread:$0]  %s58_s18, 16, %s128_s3, [#allocation3]  }
 0x11a   :  { %89 = dma.done.wait [#allocation3], 16  }
 0x11b   :  { %90 = vsyncadd [#allocation3], 4294967280 }
 0x11c   :  { %64 = vsyncpa [#allocation3], 1 }

</bundles_post_ra>
